<compile_context>
chip_gen: v7x
topology: tpu7x:2x2x1
jax: 0.10.0
libtpu: 0.0.40
codegen_flags: <defaults>
</compile_context>

<pallas_src>
import jax
import jax.numpy as jnp
from jax import lax
from jax.experimental import pallas as pl
from jax.experimental.pallas import tpu as pltpu

BN_EPS = 1e-5


def _round_up(x, m):
    return ((x + m - 1) // m) * m


def _pick_batch_tile(N, HW, HW_out):
    """Number of images folded onto the lane axis per grid step.

    Priority 1: lane-dense output store (Nb*HW_out >= 128 -> unmasked vst).
    Priority 2: amortize the ~0.35us per-step overhead further, but only while
    >=2 grid steps remain (keeps both v7x TensorCores busy) and the lane axis
    stays modest.
    """
    divisors = [d for d in range(1, N + 1) if N % d == 0]
    nb = next((d for d in divisors if d * HW_out >= 128), divisors[-1])
    for d in divisors:
        if d > nb and N // d >= 2 and d * HW <= 2048:
            nb = d
    return nb


# ----------------------------------------------------------------------------
# Pallas kernel
# ----------------------------------------------------------------------------
def _make_kernel(H, W, Cin, Cmid_p, Cout, k, stride, Nb, apply_residual):
    p = k // 2
    H_out = (H + 2 * p - k) // stride + 1
    W_out = (W + 2 * p - k) // stride + 1
    L = Nb * H * W
    k2 = k * k

    def body(x_aug, m_ref, w1, wd, w3, sel, o_ref, stack_ref):
        ones = jnp.ones((1, L), jnp.float32)

        # ---- 1x1 expansion: BN1 scale + bias folded into w1 (+ ones row) ---
        h = jnp.maximum(jnp.dot(w1, x_aug, preferred_element_type=jnp.float32),
                        0.0)                                      # (Cmid_p, L)

        # ---- depthwise kxk: lane-rolled taps (XLU) * 0/1 boundary masks,
        #      sublane-stacked into VMEM scratch, one block-diagonal MXU matmul
        for t in range(k2):
            dy, dx = divmod(t, k)
            s = (dy - p) * W + (dx - p)          # flat lane shift of this tap
            tap = h if s == 0 else pltpu.roll(h, shift=(-s) % L, axis=1)
            if s != 0:
                tap = tap * m_ref[t:t + 1, :]    # kill row/col/image-wrap bleed
            stack_ref[t * Cmid_p:(t + 1) * Cmid_p, :] = tap
        stack_ref[k2 * Cmid_p:k2 * Cmid_p + 1, :] = ones          # b2 bias row
        z = jnp.maximum(jnp.dot(wd, stack_ref[...],
                                preferred_element_type=jnp.float32), 0.0)

        # ---- 1x1 projection: BN3 scale + bias folded ([z; 1] via scratch) --
        stack_ref[:Cmid_p, :] = z
        stack_ref[Cmid_p:Cmid_p + 1, :] = ones
        y = jnp.dot(w3, stack_ref[:Cmid_p + 1, :],
                    preferred_element_type=jnp.float32)           # (Cout, L)

        # ---- stride-2 subsample LAST: 0/1 selection matmul (idle MXU) ------
        if stride == 2:
            y = jnp.dot(y, sel, preferred_element_type=jnp.float32)  # (Cout, L_out)

        if apply_residual:
            y = y + x_aug[:Cin, :]
        o_ref[...] = y

    if stride == 2:
        def kernel(x_ref, m_ref, w1_ref, wd_ref, w3_ref, sel_ref, o_ref, stack_ref):
            body(x_ref[...], m_ref, w1_ref[...], wd_ref[...], w3_ref[...],
                 sel_ref[...], o_ref, stack_ref)
    else:
        def kernel(x_ref, m_ref, w1_ref, wd_ref, w3_ref, o_ref, stack_ref):
            body(x_ref[...], m_ref, w1_ref[...], wd_ref[...], w3_ref[...],
                 None, o_ref, stack_ref)

    return kernel


# ----------------------------------------------------------------------------
# Wrapper (BN folding, weight augmentation, layout plumbing, pallas_call)
# ----------------------------------------------------------------------------
def _fold_bn(gamma, beta, mean, var, eps=BN_EPS):
    scale = gamma / jnp.sqrt(var + eps)
    return scale, beta - mean * scale


def inverted_residual_pallas(x_nchw, params, kernel_size, stride):
    N, Cin, H, W = x_nchw.shape
    w1, wd, w3 = params["w1"], params["wd"], params["w3"]
    Cmid, Cout, k = w1.shape[0], w3.shape[0], kernel_size
    k2 = k * k
    p = k // 2
    apply_residual = (Cin == Cout) and (stride == 1)

    H_out = (H + 2 * p - k) // stride + 1
    W_out = (W + 2 * p - k) // stride + 1
    HW, HW_out = H * W, H_out * W_out
    Nb = _pick_batch_tile(N, HW, HW_out)
    G = N // Nb
    L, L_out = Nb * HW, Nb * HW_out
    Cmid_p = _round_up(Cmid, 8)        # 8-aligned sublane offsets in the tap stack
    f32 = jnp.float32

    s1, b1 = _fold_bn(params["bn1_g"], params["bn1_b"], params["bn1_m"], params["bn1_v"])
    s2, b2 = _fold_bn(params["bn2_g"], params["bn2_b"], params["bn2_m"], params["bn2_v"])
    s3, b3 = _fold_bn(params["bn3_g"], params["bn3_b"], params["bn3_m"], params["bn3_v"])

    # 1x1 expansion: BN1 scale folded into weights, BN1 bias as an extra column
    # (multiplies the ones row appended to x).  Rows >= Cmid are zero padding.
    w1_aug = jnp.zeros((Cmid_p, Cin + 1), f32)
    w1_aug = w1_aug.at[:Cmid, :Cin].set(w1[:, :, 0, 0].astype(f32) * s1[:, None])
    w1_aug = w1_aug.at[:Cmid, Cin].set(b1)

    # Depthwise weights as a block-diagonal matrix acting on the sublane-stacked
    # taps (BN2 scale folded), plus a bias column for the appended ones row.
    wd_flat = wd[:, 0].reshape(Cmid, k2).astype(f32) * s2[:, None]      # (Cmid, k^2)
    wd_aug = jnp.zeros((Cmid_p, k2 * Cmid_p + 1), f32)
    ch = jnp.arange(Cmid)
    for t in range(k2):
        wd_aug = wd_aug.at[ch, t * Cmid_p + ch].set(wd_flat[:, t])
    wd_aug = wd_aug.at[:Cmid, -1].set(b2)

    # 1x1 projection: BN3 scale folded, BN3 bias column (ones row of [z; 1]).
    w3_aug = jnp.zeros((Cout, Cmid_p + 1), f32)
    w3_aug = w3_aug.at[:, :Cmid].set(w3[:, :, 0, 0].astype(f32) * s3[:, None])
    w3_aug = w3_aug.at[:, Cmid_p].set(b3)

    # Per-tap 0/1 boundary masks along the folded (Nb*H*W) lane axis: kill row /
    # column / image-boundary bleed of the circular lane rolls.
    pos = jnp.arange(L)
    yy = (pos % HW) // W
    xx = pos % W
    dw_mask = jnp.stack(
        [((yy + (t // k - p) >= 0) & (yy + (t // k - p) < H) &
          (xx + (t % k - p) >= 0) & (xx + (t % k - p) < W)).astype(f32)
         for t in range(k2)], axis=0)                                   # (k2, L)

    # Activations: NCHW with Nb images folded onto lanes + appended ones row
    # (layout plumbing only; for Nb == 1 the transpose is a no-op reshape).
    x_grp = (x_nchw.astype(f32).reshape(G, Nb, Cin, HW)
             .transpose(0, 2, 1, 3).reshape(G, Cin, L))
    x_aug = jnp.concatenate([x_grp, jnp.ones((G, 1, L), f32)], axis=1)  # (G, Cin+1, L)

    kernel = _make_kernel(H, W, Cin, Cmid_p, Cout, k, stride, Nb, apply_residual)

    in_specs = [
        pl.BlockSpec((None, Cin + 1, L), lambda g: (g, 0, 0)),
        pl.BlockSpec((k2, L), lambda g: (0, 0)),
        pl.BlockSpec((Cmid_p, Cin + 1), lambda g: (0, 0)),
        pl.BlockSpec((Cmid_p, k2 * Cmid_p + 1), lambda g: (0, 0)),
        pl.BlockSpec((Cout, Cmid_p + 1), lambda g: (0, 0)),
    ]
    args = [x_aug, dw_mask, w1_aug, wd_aug, w3_aug]

    if stride == 2:
        # Per-image 0/1 subsample selection, block-diagonal across the Nb
        # lane-folded images; applied AFTER the projection (smaller M).
        oy = jnp.arange(H_out) * stride
        ox = jnp.arange(W_out) * stride
        src_img = (oy[:, None] * W + ox[None, :]).reshape(HW_out)
        src = (jnp.arange(Nb)[:, None] * HW + src_img[None, :]).reshape(L_out)
        sel = (jnp.arange(L)[:, None] == src[None, :]).astype(f32)      # (L, L_out)
        in_specs.append(pl.BlockSpec((L, L_out), lambda g: (0, 0)))
        args.append(sel)

    flops = 2 * L * (Cmid_p * (Cin + 1) + Cmid_p * (k2 * Cmid_p + 1)
                     + Cout * (Cmid_p + 1))
    if stride == 2:
        flops += 2 * Cout * L * L_out
    flops *= G
    bytes_accessed = 4 * (x_aug.size + G * Cout * L_out + dw_mask.size
                          + w1_aug.size + wd_aug.size + w3_aug.size
                          + (L * L_out if stride == 2 else 0))

    out_grp = pl.pallas_call(
        kernel,
        out_shape=jax.ShapeDtypeStruct((G, Cout, L_out), f32),
        grid=(G,),
        in_specs=in_specs,
        out_specs=pl.BlockSpec((None, Cout, L_out), lambda g: (g, 0, 0)),
        scratch_shapes=[pltpu.VMEM((k2 * Cmid_p + 1, L), f32)],
        compiler_params=pltpu.CompilerParams(dimension_semantics=("parallel",)),
        cost_estimate=pl.CostEstimate(flops=flops, transcendentals=0,
                                      bytes_accessed=bytes_accessed),
    )(*args)

    return (out_grp.reshape(G, Cout, Nb, HW_out)
            .transpose(0, 2, 1, 3).reshape(N, Cout, H_out, W_out))


# ----------------------------------------------------------------------------
# Pure-JAX reference (inference-mode BN), used only for verification
# ----------------------------------------------------------------------------
def inverted_residual_reference(x, params, kernel_size, stride):
    dn = ("NCHW", "OIHW", "NCHW")
    p = kernel_size // 2

    def bn(h, g, b, m, v):
        g, b, m, v = (t[None, :, None, None] for t in (g, b, m, v))
        return (h - m) / jnp.sqrt(v + BN_EPS) * g + b

    Cmid = params["w1"].shape[0]
    h = lax.conv_general_dilated(x, params["w1"], (1, 1), "VALID", dimension_numbers=dn)
    h = jax.nn.relu(bn(h, params["bn1_g"], params["bn1_b"], params["bn1_m"], params["bn1_v"]))
    h = lax.conv_general_dilated(h, params["wd"], (stride, stride), [(p, p), (p, p)],
                                 dimension_numbers=dn, feature_group_count=Cmid)
    h = jax.nn.relu(bn(h, params["bn2_g"], params["bn2_b"], params["bn2_m"], params["bn2_v"]))
    h = lax.conv_general_dilated(h, params["w3"], (1, 1), "VALID", dimension_numbers=dn)
    h = bn(h, params["bn3_g"], params["bn3_b"], params["bn3_m"], params["bn3_v"])
    if x.shape[1] == h.shape[1] and stride == 1:
        h = h + x
    return h


# ----------------------------------------------------------------------------
# Deterministic parameter init (shapes follow the PyTorch __init__)
# ----------------------------------------------------------------------------
def init_params(key, in_ch, out_ch, kernel_size, expansion_factor):
    mid = in_ch * expansion_factor
    ks = jax.random.split(key, 15)

    def bn_params(k0, k1, k2, k3, ch):
        return (1.0 + 0.1 * jax.random.normal(k0, (ch,), jnp.float32),   # gamma
                0.1 * jax.random.normal(k1, (ch,), jnp.float32),         # beta
                0.1 * jax.random.normal(k2, (ch,), jnp.float32),         # running_mean
                0.5 + jax.random.uniform(k3, (ch,), jnp.float32))        # running_var

    g1, b1, m1, v1 = bn_params(ks[3], ks[4], ks[5], ks[6], mid)
    g2, b2, m2, v2 = bn_params(ks[7], ks[8], ks[9], ks[10], mid)
    g3, b3, m3, v3 = bn_params(ks[11], ks[12], ks[13], ks[14], out_ch)

    return {
        "w1": 0.2 * jax.random.normal(ks[0], (mid, in_ch, 1, 1), jnp.float32),
        "wd": 0.2 * jax.random.normal(ks[1], (mid, 1, kernel_size, kernel_size), jnp.float32),
        "w3": 0.2 * jax.random.normal(ks[2], (out_ch, mid, 1, 1), jnp.float32),
        "bn1_g": g1, "bn1_b": b1, "bn1_m": m1, "bn1_v": v1,
        "bn2_g": g2, "bn2_b": b2, "bn2_m": m2, "bn2_v": v2,
        "bn3_g": g3, "bn3_b": b3, "bn3_m": m3, "bn3_v": v3,
    }


if __name__ == "__main__":
    key = jax.random.PRNGKey(0)
    N, H, W = 2, 16, 16

    # Config 1: _InvertedResidual(4, 4, kernel_size=3, stride=1, expansion_factor=3)
    # (residual path active; Nb=1 -> two parallel grid steps, 256-lane stores)
    in_ch, out_ch, kernel_size, stride, expansion = 4, 4, 3, 1, 3
    k_x, k_p, key = jax.random.split(key, 3)
    x = jax.random.normal(k_x, (N, in_ch, H, W), jnp.float32)
    params = init_params(k_p, in_ch, out_ch, kernel_size, expansion)
    out = jax.block_until_ready(inverted_residual_pallas(x, params, kernel_size, stride))
    ref = jax.block_until_ready(inverted_residual_reference(x, params, kernel_size, stride))
    assert out.shape == ref.shape, (out.shape, ref.shape)
    assert jnp.allclose(out, ref, atol=2e-3, rtol=2e-3), float(jnp.max(jnp.abs(out - ref)))

    # Config 2: _InvertedResidual(4, 8, kernel_size=5, stride=2, expansion_factor=3)
    # (no residual; Nb=2 -> 128-lane (unmasked) output store for the strided path)
    in_ch, out_ch, kernel_size, stride, expansion = 4, 8, 5, 2, 3
    k_x, k_p, key = jax.random.split(key, 3)
    x = jax.random.normal(k_x, (N, in_ch, H, W), jnp.float32)
    params = init_params(k_p, in_ch, out_ch, kernel_size, expansion)
    out = jax.block_until_ready(inverted_residual_pallas(x, params, kernel_size, stride))
    ref = jax.block_until_ready(inverted_residual_reference(x, params, kernel_size, stride))
    assert out.shape == ref.shape, (out.shape, ref.shape)
    assert jnp.allclose(out, ref, atol=2e-3, rtol=2e-3), float(jnp.max(jnp.abs(out - ref)))

    print("KERNEL_OK")
</pallas_src>

<mosaic_0001>
module attributes {stable_mosaic.version = 11 : i64} {
  func.func @kernel(%arg0: i32, %arg1: memref<1x5x256xf32, #tpu.memory_space<vmem>>, %arg2: memref<9x256xf32, #tpu.memory_space<vmem>>, %arg3: memref<16x5xf32, #tpu.memory_space<vmem>>, %arg4: memref<16x145xf32, #tpu.memory_space<vmem>>, %arg5: memref<4x17xf32, #tpu.memory_space<vmem>>, %arg6: memref<1x4x256xf32, #tpu.memory_space<vmem>>, %arg7: memref<145x256xf32, #tpu.memory_space<vmem>>) attributes {dimension_semantics = [#tpu.dimension_semantics<parallel>], iteration_bounds = array<i64: 2>, scalar_prefetch = 0 : i64, scratch_operands = 1 : i64, tpu.core_type = #tpu.core_type<tc>, window_params = [{transform_indices = @transform_0, window_bounds = array<i64: 1, 5, 256>}, {pipeline_mode = #tpu.pipeline_mode<synchronous>, transform_indices = @transform_1, window_bounds = array<i64: 9, 256>}, {pipeline_mode = #tpu.pipeline_mode<synchronous>, transform_indices = @transform_2, window_bounds = array<i64: 16, 5>}, {pipeline_mode = #tpu.pipeline_mode<synchronous>, transform_indices = @transform_3, window_bounds = array<i64: 16, 145>}, {pipeline_mode = #tpu.pipeline_mode<synchronous>, transform_indices = @transform_4, window_bounds = array<i64: 4, 17>}, {transform_indices = @transform_5, window_bounds = array<i64: 1, 4, 256>}]} {
    %c0 = arith.constant 0 : index
    %c0_0 = arith.constant 0 : index
    %c0_1 = arith.constant 0 : index
    %0 = vector.load %arg1[%c0, %c0_0, %c0_1] : memref<1x5x256xf32, #tpu.memory_space<vmem>>, vector<1x5x256xf32>
    %1 = vector.shape_cast %0 : vector<1x5x256xf32> to vector<5x256xf32>
    %c0_2 = arith.constant 0 : index
    %c0_3 = arith.constant 0 : index
    %2 = vector.load %arg3[%c0_2, %c0_3] : memref<16x5xf32, #tpu.memory_space<vmem>>, vector<16x5xf32>
    %c0_4 = arith.constant 0 : index
    %c0_5 = arith.constant 0 : index
    %3 = vector.load %arg4[%c0_4, %c0_5] : memref<16x145xf32, #tpu.memory_space<vmem>>, vector<16x145xf32>
    %c0_6 = arith.constant 0 : index
    %c0_7 = arith.constant 0 : index
    %4 = vector.load %arg5[%c0_6, %c0_7] : memref<4x17xf32, #tpu.memory_space<vmem>>, vector<4x17xf32>
    %cst = arith.constant 1.000000e+00 : f32
    %5 = vector.broadcast %cst : f32 to vector<1x256xf32>
    %cst_8 = arith.constant dense<0.000000e+00> : vector<16x256xf32>
    %6 = tpu.matmul %2, %1, %cst_8 {dimension_numbers = #tpu.dot_dimension_numbers<[1], [0], [0], [1], [0, 0, 1, 1], [], []>} : vector<16x5xf32>, vector<5x256xf32>, vector<16x256xf32> -> vector<16x256xf32>
    %cst_9 = arith.constant 0.000000e+00 : f32
    %7 = vector.broadcast %cst_9 : f32 to vector<16x256xf32>
    %8 = arith.maximumf %6, %7 : vector<16x256xf32>
    %c17_i32 = arith.constant 17 : i32
    %9 = tpu.dynamic_rotate %8 by %c17_i32 dim 1 : vector<16x256xf32>, i32 -> vector<16x256xf32>
    %c0_10 = arith.constant 0 : index
    %c0_11 = arith.constant 0 : index
    %10 = vector.load %arg2[%c0_10, %c0_11] : memref<9x256xf32, #tpu.memory_space<vmem>>, vector<1x256xf32>
    %11 = vector.broadcast %10 : vector<1x256xf32> to vector<16x256xf32>
    %12 = arith.mulf %9, %11 : vector<16x256xf32>
    %c0_12 = arith.constant 0 : index
    %c0_13 = arith.constant 0 : index
    %13 = vector.load %arg7[%c0_12, %c0_13] : memref<145x256xf32, #tpu.memory_space<vmem>>, vector<16x256xf32>
    tpu.vector_store %arg7[%c0_12, %c0_13], %12 {strides = array<i32>} : memref<145x256xf32, #tpu.memory_space<vmem>>, vector<16x256xf32>,
    %c16_i32 = arith.constant 16 : i32
    %14 = tpu.dynamic_rotate %8 by %c16_i32 dim 1 : vector<16x256xf32>, i32 -> vector<16x256xf32>
    %c1 = arith.constant 1 : index
    %c0_14 = arith.constant 0 : index
    %15 = vector.load %arg2[%c1, %c0_14] : memref<9x256xf32, #tpu.memory_space<vmem>>, vector<1x256xf32>
    %16 = vector.broadcast %15 : vector<1x256xf32> to vector<16x256xf32>
    %17 = arith.mulf %14, %16 : vector<16x256xf32>
    %c16 = arith.constant 16 : index
    %c0_15 = arith.constant 0 : index
    %18 = vector.load %arg7[%c16, %c0_15] : memref<145x256xf32, #tpu.memory_space<vmem>>, vector<16x256xf32>
    tpu.vector_store %arg7[%c16, %c0_15], %17 {strides = array<i32>} : memref<145x256xf32, #tpu.memory_space<vmem>>, vector<16x256xf32>,
    %c15_i32 = arith.constant 15 : i32
    %19 = tpu.dynamic_rotate %8 by %c15_i32 dim 1 : vector<16x256xf32>, i32 -> vector<16x256xf32>
    %c2 = arith.constant 2 : index
    %c0_16 = arith.constant 0 : index
    %20 = vector.load %arg2[%c2, %c0_16] : memref<9x256xf32, #tpu.memory_space<vmem>>, vector<1x256xf32>
    %21 = vector.broadcast %20 : vector<1x256xf32> to vector<16x256xf32>
    %22 = arith.mulf %19, %21 : vector<16x256xf32>
    %c32 = arith.constant 32 : index
    %c0_17 = arith.constant 0 : index
    %23 = vector.load %arg7[%c32, %c0_17] : memref<145x256xf32, #tpu.memory_space<vmem>>, vector<16x256xf32>
    tpu.vector_store %arg7[%c32, %c0_17], %22 {strides = array<i32>} : memref<145x256xf32, #tpu.memory_space<vmem>>, vector<16x256xf32>,
    %c1_i32 = arith.constant 1 : i32
    %24 = tpu.dynamic_rotate %8 by %c1_i32 dim 1 : vector<16x256xf32>, i32 -> vector<16x256xf32>
    %c3 = arith.constant 3 : index
    %c0_18 = arith.constant 0 : index
    %25 = vector.load %arg2[%c3, %c0_18] : memref<9x256xf32, #tpu.memory_space<vmem>>, vector<1x256xf32>
    %26 = vector.broadcast %25 : vector<1x256xf32> to vector<16x256xf32>
    %27 = arith.mulf %24, %26 : vector<16x256xf32>
    %c48 = arith.constant 48 : index
    %c0_19 = arith.constant 0 : index
    %28 = vector.load %arg7[%c48, %c0_19] : memref<145x256xf32, #tpu.memory_space<vmem>>, vector<16x256xf32>
    tpu.vector_store %arg7[%c48, %c0_19], %27 {strides = array<i32>} : memref<145x256xf32, #tpu.memory_space<vmem>>, vector<16x256xf32>,
    %c64 = arith.constant 64 : index
    %c0_20 = arith.constant 0 : index
    %29 = vector.load %arg7[%c64, %c0_20] : memref<145x256xf32, #tpu.memory_space<vmem>>, vector<16x256xf32>
    tpu.vector_store %arg7[%c64, %c0_20], %8 {strides = array<i32>} : memref<145x256xf32, #tpu.memory_space<vmem>>, vector<16x256xf32>,
    %c255_i32 = arith.constant 255 : i32
    %30 = tpu.dynamic_rotate %8 by %c255_i32 dim 1 : vector<16x256xf32>, i32 -> vector<16x256xf32>
    %c5 = arith.constant 5 : index
    %c0_21 = arith.constant 0 : index
    %31 = vector.load %arg2[%c5, %c0_21] : memref<9x256xf32, #tpu.memory_space<vmem>>, vector<1x256xf32>
    %32 = vector.broadcast %31 : vector<1x256xf32> to vector<16x256xf32>
    %33 = arith.mulf %30, %32 : vector<16x256xf32>
    %c80 = arith.constant 80 : index
    %c0_22 = arith.constant 0 : index
    %34 = vector.load %arg7[%c80, %c0_22] : memref<145x256xf32, #tpu.memory_space<vmem>>, vector<16x256xf32>
    tpu.vector_store %arg7[%c80, %c0_22], %33 {strides = array<i32>} : memref<145x256xf32, #tpu.memory_space<vmem>>, vector<16x256xf32>,
    %c241_i32 = arith.constant 241 : i32
    %35 = tpu.dynamic_rotate %8 by %c241_i32 dim 1 : vector<16x256xf32>, i32 -> vector<16x256xf32>
    %c6 = arith.constant 6 : index
    %c0_23 = arith.constant 0 : index
    %36 = vector.load %arg2[%c6, %c0_23] : memref<9x256xf32, #tpu.memory_space<vmem>>, vector<1x256xf32>
    %37 = vector.broadcast %36 : vector<1x256xf32> to vector<16x256xf32>
    %38 = arith.mulf %35, %37 : vector<16x256xf32>
    %c96 = arith.constant 96 : index
    %c0_24 = arith.constant 0 : index
    %39 = vector.load %arg7[%c96, %c0_24] : memref<145x256xf32, #tpu.memory_space<vmem>>, vector<16x256xf32>
    tpu.vector_store %arg7[%c96, %c0_24], %38 {strides = array<i32>} : memref<145x256xf32, #tpu.memory_space<vmem>>, vector<16x256xf32>,
    %c240_i32 = arith.constant 240 : i32
    %40 = tpu.dynamic_rotate %8 by %c240_i32 dim 1 : vector<16x256xf32>, i32 -> vector<16x256xf32>
    %c7 = arith.constant 7 : index
    %c0_25 = arith.constant 0 : index
    %41 = vector.load %arg2[%c7, %c0_25] : memref<9x256xf32, #tpu.memory_space<vmem>>, vector<1x256xf32>
    %42 = vector.broadcast %41 : vector<1x256xf32> to vector<16x256xf32>
    %43 = arith.mulf %40, %42 : vector<16x256xf32>
    %c112 = arith.constant 112 : index
    %c0_26 = arith.constant 0 : index
    %44 = vector.load %arg7[%c112, %c0_26] : memref<145x256xf32, #tpu.memory_space<vmem>>, vector<16x256xf32>
    tpu.vector_store %arg7[%c112, %c0_26], %43 {strides = array<i32>} : memref<145x256xf32, #tpu.memory_space<vmem>>, vector<16x256xf32>,
    %c239_i32 = arith.constant 239 : i32
    %45 = tpu.dynamic_rotate %8 by %c239_i32 dim 1 : vector<16x256xf32>, i32 -> vector<16x256xf32>
    %c8 = arith.constant 8 : index
    %c0_27 = arith.constant 0 : index
    %46 = vector.load %arg2[%c8, %c0_27] : memref<9x256xf32, #tpu.memory_space<vmem>>, vector<1x256xf32>
    %47 = vector.broadcast %46 : vector<1x256xf32> to vector<16x256xf32>
    %48 = arith.mulf %45, %47 : vector<16x256xf32>
    %c128 = arith.constant 128 : index
    %c0_28 = arith.constant 0 : index
    %49 = vector.load %arg7[%c128, %c0_28] : memref<145x256xf32, #tpu.memory_space<vmem>>, vector<16x256xf32>
    tpu.vector_store %arg7[%c128, %c0_28], %48 {strides = array<i32>} : memref<145x256xf32, #tpu.memory_space<vmem>>, vector<16x256xf32>,
    %c144 = arith.constant 144 : index
    %c0_29 = arith.constant 0 : index
    %50 = vector.load %arg7[%c144, %c0_29] : memref<145x256xf32, #tpu.memory_space<vmem>>, vector<1x256xf32>
    tpu.vector_store %arg7[%c144, %c0_29], %5 {strides = array<i32>} : memref<145x256xf32, #tpu.memory_space<vmem>>, vector<1x256xf32>,
    %c0_30 = arith.constant 0 : index
    %c0_31 = arith.constant 0 : index
    %51 = vector.load %arg7[%c0_30, %c0_31] : memref<145x256xf32, #tpu.memory_space<vmem>>, vector<145x256xf32>
    %cst_32 = arith.constant dense<0.000000e+00> : vector<16x256xf32>
    %52 = tpu.matmul %3, %51, %cst_32 {dimension_numbers = #tpu.dot_dimension_numbers<[1], [0], [0], [1], [0, 0, 1, 1], [], []>} : vector<16x145xf32>, vector<145x256xf32>, vector<16x256xf32> -> vector<16x256xf32>
    %cst_33 = arith.constant 0.000000e+00 : f32
    %53 = vector.broadcast %cst_33 : f32 to vector<16x256xf32>
    %54 = arith.maximumf %52, %53 : vector<16x256xf32>
    %c0_34 = arith.constant 0 : index
    %c0_35 = arith.constant 0 : index
    %55 = vector.load %arg7[%c0_34, %c0_35] : memref<145x256xf32, #tpu.memory_space<vmem>>, vector<16x256xf32>
    tpu.vector_store %arg7[%c0_34, %c0_35], %54 {strides = array<i32>} : memref<145x256xf32, #tpu.memory_space<vmem>>, vector<16x256xf32>,
    %c16_36 = arith.constant 16 : index
    %c0_37 = arith.constant 0 : index
    %56 = vector.load %arg7[%c16_36, %c0_37] : memref<145x256xf32, #tpu.memory_space<vmem>>, vector<1x256xf32>
    tpu.vector_store %arg7[%c16_36, %c0_37], %5 {strides = array<i32>} : memref<145x256xf32, #tpu.memory_space<vmem>>, vector<1x256xf32>,
    %c0_38 = arith.constant 0 : index
    %c0_39 = arith.constant 0 : index
    %57 = vector.load %arg7[%c0_38, %c0_39] : memref<145x256xf32, #tpu.memory_space<vmem>>, vector<17x256xf32>
    %cst_40 = arith.constant dense<0.000000e+00> : vector<4x256xf32>
    %58 = tpu.matmul %4, %57, %cst_40 {dimension_numbers = #tpu.dot_dimension_numbers<[1], [0], [0], [1], [0, 0, 1, 1], [], []>} : vector<4x17xf32>, vector<17x256xf32>, vector<4x256xf32> -> vector<4x256xf32>
    %59 = vector.extract_strided_slice %1 {offsets = [0, 0], sizes = [4, 256], strides = [1, 1]} : vector<5x256xf32> to vector<4x256xf32>
    %60 = arith.addf %58, %59 : vector<4x256xf32>
    %c0_41 = arith.constant 0 : index
    %c0_42 = arith.constant 0 : index
    %c0_43 = arith.constant 0 : index
    %61 = vector.load %arg6[%c0_41, %c0_42, %c0_43] : memref<1x4x256xf32, #tpu.memory_space<vmem>>, vector<1x4x256xf32>
    %62 = vector.shape_cast %61 : vector<1x4x256xf32> to vector<4x256xf32>
    %63 = vector.shape_cast %60 : vector<4x256xf32> to vector<1x4x256xf32>
    tpu.vector_store %arg6[%c0_41, %c0_42, %c0_43], %63 {strides = array<i32>} : memref<1x4x256xf32, #tpu.memory_space<vmem>>, vector<1x4x256xf32>,
    return
  }
  func.func @transform_0(%arg0: i32) -> (i32, i32, i32) {
    %c0_i32 = arith.constant 0 : i32
    %c0_i32_0 = arith.constant 0 : i32
    %c0_i32_1 = arith.constant 0 : i32
    return %arg0, %c0_i32, %c0_i32_0 : i32, i32, i32
  }
  func.func @transform_1(%arg0: i32) -> (i32, i32) {
    %c0_i32 = arith.constant 0 : i32
    %c0_i32_0 = arith.constant 0 : i32
    %c0_i32_1 = arith.constant 0 : i32
    return %c0_i32, %c0_i32_0 : i32, i32
  }
  func.func @transform_2(%arg0: i32) -> (i32, i32) {
    %c0_i32 = arith.constant 0 : i32
    %c0_i32_0 = arith.constant 0 : i32
    %c0_i32_1 = arith.constant 0 : i32
    return %c0_i32, %c0_i32_0 : i32, i32
  }
  func.func @transform_3(%arg0: i32) -> (i32, i32) {
    %c0_i32 = arith.constant 0 : i32
    %c0_i32_0 = arith.constant 0 : i32
    %c0_i32_1 = arith.constant 0 : i32
    return %c0_i32, %c0_i32_0 : i32, i32
  }
  func.func @transform_4(%arg0: i32) -> (i32, i32) {
    %c0_i32 = arith.constant 0 : i32
    %c0_i32_0 = arith.constant 0 : i32
    %c0_i32_1 = arith.constant 0 : i32
    return %c0_i32, %c0_i32_0 : i32, i32
  }
  func.func @transform_5(%arg0: i32) -> (i32, i32, i32) {
    %c0_i32 = arith.constant 0 : i32
    %c0_i32_0 = arith.constant 0 : i32
    %c0_i32_1 = arith.constant 0 : i32
    return %arg0, %c0_i32, %c0_i32_0 : i32, i32, i32
  }
}

</mosaic_0001>

<bundles_post_ra>
// kernel: tpu_custom_call.1
= control target key start
LH: loop header
LB: loop body
LE: loop exit
PB: predicated region body
PF: predicated region fallthrough
CT: control target
= control target key end

     0   :  { %10 = vsyncpa [#allocation4], 0  ;;  %s1490_s0 = inlined_call_operand.vmem [shape: f32[2,5,256], index: 0, kind: input, shape index: {}]   ;;  %s1491_s1 = inlined_call_operand.vmem [shape: f32[9,256], index: 1, kind: input, shape index: {}]   ;;  %s1492_s2 = inlined_call_operand.vmem [shape: f32[16,5], index: 2, kind: input, shape index: {}]   ;;  %s1493_s3 = inlined_call_operand.vmem [shape: f32[16,145], index: 3, kind: input, shape index: {}]   ;;  %s1494_s4 = inlined_call_operand.vmem [shape: f32[4,17], index: 4, kind: input, shape index: {}]   ;;  %s1495_s5 = inlined_call_operand.hbm [shape: f32[2,4,256], index: 5, kind: output, shape index: {}]  }
   0x1   :  { %12 = vsyncpa [#allocation4 + $0x1], 0  ;;  %s1142_s18 = smov 0   ;;  %s1144_s19 = smov 0  }
   0x2   :  { %s1146_s20 = smov 0   ;;  %s1148_s21 = smov 0  }
   0x3 LB: > { %s1163_s22 = sadd.s32 4294967295, %s1099_s21   ;;  %s916_s23 = sadd.s32 4294967294, %s1099_s21   ;;  %s1099_s21 = sphi %s1148_s21, %s1503_s21   ;;  %s1095_s20 = sphi %s1146_s20, %s1502_s20   ;;  %s1091_s19 = sphi %s1144_s19, %s1501_s19   ;;  %s1087_s18 = sphi %s1142_s18, %s1500_s18  }
   0x4   : > { %s1167_s24 = sadd.s32 1, %s1099_s21   ;;  %s135_s25 = sadd.s32 1, %s1095_s20 }
   0x5   : > { %s132_s26 = ssub.s32 %s1099_s21, %s1167_s24  ;;  %p145_p0 = scmp.ne.s32.totalorder %s1095_s20, %s1091_s19 }
   0x6   : > { %p133_p1 = scmp.eq.s32.totalorder %s132_s26, 0  ;;  %p146_p2 = scmp.eq.s32.totalorder %s1163_s22, 1 }
   0x7   : > { %p151_p3 = scmp.ne.s32.totalorder %s1091_s19, %s1087_s18  ;;  %p152_p4 = scmp.eq.s32.totalorder %s916_s23, 1 }
   0x8   : > { %s1178_s27 = scalar_select %p133_p1, %s1095_s20, %s135_s25  }
   0x9   : > { %p1180_p5 = por %p146_p2, %p145_p0  ;;  %p1184_p6 = por %p152_p4, %p151_p3 }
   0xa   : > { %p919_p7 = scmp.ge.s32.totalorder %s1099_s21, 1  ;;  %p190_p8 = scmp.lt.s32.totalorder %s1099_s21, 3 }
   0xc   : > { %p191_p9 = pnand %p919_p7, %p190_p8 }
   0xd   : > { %p218_p10 = scmp.lt.s32.totalorder (!%p191_p9), %s1163_s22, 1  ;;  %v1101_v0 = vmov (!%p191_p9), 0.0   ;;  %vm239_vm0 = vcmask (!%p191_p9), 1044480   ;;  %v225_v3 = vld [vmem:[%s1492_s2] sm:$0xff] (!%p191_p9)  ;;  %vm232_vm1 = vcmask (!%p191_p9), 39936   ;;  %v226_v4 = vld [vmem:[%s1492_s2 + $0x8] sm:$0xff] (!%p191_p9)  ;;  %v335_v15 = vlaneseq (!%p191_p9) }
   0xe   : > { %194 = sbr.rel (%p191_p9) target bundleno = 887 (0x377), region = 40  ;;  %310 = vmatprep.mubr.f32.mxu0 (!%p191_p9), %v1101_v0  ;;  %s1102_s14 = smov (!%p191_p9), 17   ;;  %v1109_v17 = vmov (!%p191_p9), 1.0   ;;  %v228_v18 = vld [vmem:[%s1493_s3 + $0x8] sm:$0xff] (!%p191_p9)  ;;  %vm649_vm3 = vcmask (!%p191_p9), 138240   ;;  %vm656_vm12 = vcmask (!%p191_p9), 1040384  }
   0xf   : > { %s1103_s15 = smov (!%p191_p9), 16   ;;  %s1104_s16 = smov (!%p191_p9), 15   ;;  %vm1237_vm2 = vcmp.lt.s32.totalorder (!%p191_p9), %v335_v15, 256  ;;  %936 = vmatprep.mubr.msk.f32.mxu1 (!%p191_p9), %vm649_vm3, %v228_v18  ;;  %v345_v23 = vshrl.u32 (!%p191_p9), %v335_v15, 7  ;;  %v1268_v27 = vand.u32 (!%p191_p9), 127, %v335_v15 }
  0x10   : > { %s1105_s17 = smov (!%p191_p9), 1   ;;  %s1106_s23 = smov (!%p191_p9), 127   ;;  %609 = vst.msk [vmem:[#allocation2 + $0x120] ss:$8 sm:$0x3] (!%p191_p9), %vm1237_vm2, %v1109_v17 }
  0x11   : > { %s1107_s25 = smov (!%p191_p9), 113   ;;  %s1108_s26 = smov (!%p191_p9), 112   ;;  %v927_v26 = vld [vmem:[%s1491_s1 + $0x1] ss:$8 sm:$0x3] (!%p191_p9)  ;;  %v1270_v28 = vsub.s32 (!%p191_p9), 0, %v345_v23 }
  0x12   : > { %v1272_v29 = vsub.s32 (!%p191_p9), 1, %v345_v23  ;;  %vm370_vm4 = vcmp.lt.s32.totalorder (!%p191_p9), %v1268_v27, 16  ;;  %v928_v34 = vld [vmem:[%s1491_s1 + $0x2] ss:$8 sm:$0x3] (!%p191_p9)  ;;  %vm404_vm5 = vcmp.lt.s32.totalorder (!%p191_p9), %v1268_v27, 15 }
  0x13   : > { %v381_v32 = vrot.slane (!%p191_p9), %v927_v26, %v1270_v28  ;;  %v415_v41 = vrot.slane (!%p191_p9), %v928_v34, %v1270_v28  ;;  %v929_v43 = vld [vmem:[%s1491_s1 + $0x3] ss:$8 sm:$0x3] (!%p191_p9)  ;;  %vm438_vm6 = vcmp.lt.s32.totalorder (!%p191_p9), %v1268_v27, 1  ;;  %vm337_vm7 = vcmp.lt.s32.totalorder (!%p191_p9), %v1268_v27, 17 }
  0x14   : > { %v385_v33 = vrot.slane (!%p191_p9), %v927_v26, %v1272_v29  ;;  %v419_v42 = vrot.slane (!%p191_p9), %v928_v34, %v1272_v29  ;;  %v449_v50 = vrot.slane (!%p191_p9), %v929_v43, %v1270_v28  ;;  %v453_v51 = vrot.slane (!%p191_p9), %v929_v43, %v1272_v29  ;;  %v342_v52 = vld [vmem:[%s1491_s1] ss:$8 sm:$0x3] (!%p191_p9)  ;;  %v930_v15 = vld [vmem:[%s1491_s1 + $0x5] ss:$8 sm:$0x3] (!%p191_p9) }
  0x15   : > { %s219_s30 = scalar_select %p218_p10, %s1163_s22, 1  ;;  %v347_v59 = vrot.slane %v342_v52, %v1270_v28  ;;  %v351_v60 = vrot.slane %v342_v52, %v1272_v29  ;;  %vm476_vm8 = vcmp.lt.s32.totalorder %v1268_v27, 127  ;;  %v487_v23 = vrot.slane %v930_v15, %v1270_v28 }
  0x16   : > { %vm510_vm9 = vcmp.lt.s32.totalorder %v1268_v27, 113  ;;  %vm544_vm10 = vcmp.lt.s32.totalorder %v1268_v27, 112  ;;  %vm578_vm11 = vcmp.lt.s32.totalorder %v1268_v27, 111  ;;  %v230_v27 = vld [vmem:[%s1493_s3 + $0x18] sm:$0xff] }
  0x17   : > { %s946_s6 = sshll.u32 %s219_s30, 4  ;;  %s1110_s30 = smov 111  }
  0x18   : > { %s222_s9 = scalar_lea.vmem %s1490_s0, %s946_s6 }
  0x19   : > { %v1195_v1 = vld [vmem:[%s222_s9 + $0x8] sm:$0x1f]  ;;  %v1197_v2 = vld [vmem:[%s222_s9] sm:$0x1f] }
  0x1a   : > { %923 = vmatprep.subr.msk.mxu0 %vm239_vm0, %v1195_v1 }
  0x1b   : > { %924 = vmatpush1.msk.msra.mxu0 %vm239_vm0, %v1197_v2 }
  0x1c   : > { %925 = vmatmul.mubr.msk.f32.vlgmr.msra.gmra.mrb[0].mxu0 %vm232_vm1, %v225_v3 }
  0x1d   : > { %316 = vmatprep.mubr.f32.mxu0 %v1101_v0 }
  0x20   : > { %926 = vmatmul.mubr.msk.f32.gmra.mrb[2].mxu0 %vm232_vm1, %v226_v4 }
  0x21   : > { %830 = vmatprep.mubr.f32.mxu0 %v1101_v0 }
  0xef   : > { %v312_v5 = vpop.f32.mrb[0].mxu0 }
  0xf0   : > { %v1207_v6 = vmax.f32 %v312_v5, 0.0  ;;  %v314_v7 = vpop.f32.mrb[1].mxu0 }
  0xf1   : > { %v1209_v8 = vmax.f32 %v314_v7, 0.0 }
  0xf2   : > { %327 = vrot.lane.b32.xlu0 %v1207_v6, %s1102_s14 }
  0xf3   : > { %331 = vrot.lane.b32.xlu1 %v1209_v8, %s1102_s14  ;;  %v318_v9 = vpop.f32.mrb[2].mxu0 }
  0xf4   : > { %v1213_v10 = vmax.f32 %v318_v9, 0.0  ;;  %v320_v11 = vpop.f32.mrb[3].mxu0 }
  0xf5   : > { %v1215_v12 = vmax.f32 %v320_v11, 0.0 }
  0xf6   : > { %362 = vrot.lane.b32.xlu0 %v1207_v6, %s1103_s15  ;;  %v966_v13 = vpack.c.bf16 %v1213_v10, %v1207_v6 }
  0xf7   : > { %364 = vrot.lane.b32.xlu1 %v1213_v10, %s1103_s15  ;;  %v964_v14 = vpack.c.bf16 %v1215_v12, %v1209_v8 }
  0xfa   : > { %396 = vrot.lane.b32.xlu0 %v1207_v6, %s1104_s16 }
  0xfb   : > { %398 = vrot.lane.b32.xlu1 %v1213_v10, %s1104_s16 }
  0xfe   : > { %430 = vrot.lane.b32.xlu0 %v1207_v6, %s1105_s17 }
  0xff   : > { %432 = vrot.lane.b32.xlu1 %v1213_v10, %s1105_s17 }
 0x102   : > { %366 = vrot.lane.b32.xlu0 %v1209_v8, %s1103_s15 }
 0x103   : > { %470 = vrot.lane.b32.xlu1 %v1213_v10, %s1106_s23 }
 0x106   : > { %400 = vrot.lane.b32.xlu0 %v1209_v8, %s1104_s16 }
 0x107   : > { %504 = vrot.lane.b32.xlu1 %v1213_v10, %s1107_s25 }
 0x10a   : > { %434 = vrot.lane.b32.xlu0 %v1209_v8, %s1105_s17 }
 0x10b   : > { %538 = vrot.lane.b32.xlu1 %v1213_v10, %s1108_s26 }
 0x10e   : > { %329 = vrot.lane.b32.xlu0 %v1213_v10, %s1102_s14 }
 0x10f   : > { %333 = vrot.lane.b32.xlu1 %v1215_v12, %s1102_s14 }
 0x112   : > { %468 = vrot.lane.b32.xlu0 %v1207_v6, %s1106_s23 }
 0x113   : > { %368 = vrot.lane.b32.xlu1 %v1215_v12, %s1103_s15 }
 0x116   : > { %472 = vrot.lane.b32.xlu0 %v1209_v8, %s1106_s23 }
 0x117   : > { %402 = vrot.lane.b32.xlu1 %v1215_v12, %s1104_s16  ;;  %s215_s16 = sand.u32 1, %s1091_s19  }
 0x118   : > { %s843_s8 = scalar_lea.sflag [#allocation4], %s215_s16 }
 0x11a   : > { %502 = vrot.lane.b32.xlu0 %v1207_v6, %s1107_s25 }
 0x11b   : > { %436 = vrot.lane.b32.xlu1 %v1215_v12, %s1105_s17  ;;  %s920_s17 = sshll.u32 %s215_s16, 3 }
 0x11e   : > { %506 = vrot.lane.b32.xlu0 %v1209_v8, %s1107_s25 }
 0x11f   : > { %572 = vrot.lane.b32.xlu1 %v1213_v10, %s1110_s30 }
 0x122   : > { %536 = vrot.lane.b32.xlu0 %v1207_v6, %s1108_s26 }
 0x123   : > { %474 = vrot.lane.b32.xlu1 %v1215_v12, %s1106_s23  ;;  %s947_s23 = sshll.u32 %s1163_s22, 7  ;;  %s1111_s22 = smov [#allocation3]  }
 0x124   : > { %s1448_s7 = scalar_lea.hbm %s1495_s5, %s947_s23  ;;  %s1041_s10 = sshll.u32 %s1111_s22, 4  ;;  %s1042_s10 = int_to_ptr.vmem [resolvable:$false] %s1041_s10 }
 0x125   : > { %s1043_s11 = scalar_lea.vmem %s1042_s10, 256 }
 0x126   : > { %540 = vrot.lane.b32.xlu0 %v1209_v8, %s1108_s26 }
 0x127   : > { %508 = vrot.lane.b32.xlu1 %v1215_v12, %s1107_s25  ;;  %s217_s25 = scalar_lea.vmem [#allocation3], %s920_s17 }
 0x12a   : > { %570 = vrot.lane.b32.xlu0 %v1207_v6, %s1110_s30 }
 0x12b   : > { %542 = vrot.lane.b32.xlu1 %v1215_v12, %s1108_s26  ;;  %s857_s26 = sshll.u32 %s217_s25, 4  ;;  %s1450_s26 = int_to_ptr.vmem [resolvable:$true] %s857_s26 }
 0x12c   : > { %s1037_s9 = scalar_lea.vmem %s1450_s26, 128  ;;  %p1044_p0 = scmp.lt.s32.totalorder %s1450_s26, %s1042_s10 }
 0x12d   : > { %p1038_p11 = scmp.ne.s32.totalorder %s1450_s26, %s1037_s9  ;;  %p1045_p1 = scmp.lt.s32.totalorder %s1043_s11, %s1037_s9 }
 0x12e   : > { %574 = vrot.lane.b32.xlu0 %v1209_v8, %s1110_s30 }
 0x12f   : > { %576 = vrot.lane.b32.xlu1 %v1215_v12, %s1110_s30  ;;  %p1039_p12 = pnand %p1038_p11, %p1180_p5  ;;  %p1046_p2 = por %p1045_p1, %p1044_p0 }
 0x131   : > { %p1040_p13 = pneg %p1039_p12 }
 0x133   : > { %p1047_p3 = pnand %p1046_p2, %p1040_p13 }
 0x164   : > { %v328_v19 = vpop.permute.xlu0 %327 }
 0x165   : > { %v332_v20 = vpop.permute.xlu1 %331 }
 0x166   : > { %v338_v61 = vsel %vm337_vm7, %v328_v19, %v332_v20  ;;  %v340_v62 = vsel %vm337_vm7, %v332_v20, %v328_v19 }
 0x167   : > { %v354_v5 = vmul.f32 %v347_v59, %v340_v62  ;;  %v355_v7 = vmul.f32 %v351_v60, %v338_v61 }
 0x168   : > { %v363_v21 = vpop.permute.xlu0 %362 }
 0x169   : > { %v1261_v22 = vpop.permute.xlu1 %364 }
 0x16c   : > { %v397_v24 = vpop.permute.xlu0 %396 }
 0x16d   : > { %v1263_v25 = vpop.permute.xlu1 %398 }
 0x170   : > { %v431_v30 = vpop.permute.xlu0 %430 }
 0x171   : > { %v1274_v31 = vpop.permute.xlu1 %432 }
 0x174   : > { %v367_v35 = vpop.permute.xlu0 %366 }
 0x175   : > { %v371_v36 = vsel %vm370_vm4, %v363_v21, %v367_v35  ;;  %v373_v37 = vsel %vm370_vm4, %v367_v35, %v363_v21  ;;  %v1286_v38 = vpop.permute.xlu1 %470 }
 0x176   : > { %v1289_v39 = vmul.f32 %v381_v32, %v373_v37  ;;  %v1291_v40 = vmul.f32 %v385_v33, %v371_v36 }
 0x178   : > { %392 = vst [vmem:[#allocation2 + $0x20] sm:$0xff] %v1289_v39  ;;  %393 = vst [vmem:[#allocation2 + $0x28] sm:$0xff] %v1291_v40  ;;  %v401_v44 = vpop.permute.xlu0 %400 }
 0x179   : > { %v405_v45 = vsel %vm404_vm5, %v397_v24, %v401_v44  ;;  %v407_v46 = vsel %vm404_vm5, %v401_v44, %v397_v24  ;;  %v1304_v47 = vpop.permute.xlu1 %504  ;;  %749 = vst.msk [vmem:[#allocation2 + $0x20] ss:$8 sm:$0x3] %vm1237_vm2, %v1109_v17  ;;  %v491_v24 = vrot.slane %v930_v15, %v1272_v29 }
 0x17a   : > { %v1309_v48 = vmul.f32 %v415_v41, %v407_v46  ;;  %v1311_v49 = vmul.f32 %v419_v42, %v405_v45 }
 0x17c   : > { %v435_v53 = vpop.permute.xlu0 %434 }
 0x17d   : > { %v439_v54 = vsel %vm438_vm6, %v431_v30, %v435_v53  ;;  %v441_v55 = vsel %vm438_vm6, %v435_v53, %v431_v30  ;;  %v1323_v56 = vpop.permute.xlu1 %538  ;;  %v931_v53 = vld [vmem:[%s1491_s1 + $0x6] ss:$8 sm:$0x3] }
 0x17e   : > { %v1325_v57 = vmul.f32 %v449_v50, %v441_v55  ;;  %v1327_v58 = vmul.f32 %v453_v51, %v439_v54 }
 0x180   : > { %v330_v63 = vpop.permute.xlu0 %329 }
 0x181   : > { %v334_v0 = vpop.permute.xlu1 %333 }
 0x182   : > { %v339_v3 = vsel %vm337_vm7, %v330_v63, %v334_v0  ;;  %v341_v4 = vsel %vm337_vm7, %v334_v0, %v330_v63 }
 0x183   : > { %v356_v9 = vmul.f32 %v347_v59, %v341_v4  ;;  %v357_v11 = vmul.f32 %v351_v60, %v339_v3  ;;  %v525_v59 = vrot.slane %v931_v53, %v1272_v29 }
 0x184   : > { %v469_v16 = vpop.permute.xlu0 %468 }
 0x185   : > { %v369_v17 = vpop.permute.xlu1 %368  ;;  %v948_v18 = vpack.c.bf16 %v357_v11, %v355_v7  ;;  %v950_v21 = vpack.c.bf16 %v356_v9, %v354_v5 }
 0x186   : > { %v372_v19 = vsel %vm370_vm4, %v1261_v22, %v369_v17  ;;  %v374_v20 = vsel %vm370_vm4, %v369_v17, %v1261_v22 }
 0x187   : > { %v390_v26 = vmul.f32 %v381_v32, %v374_v20  ;;  %v391_v30 = vmul.f32 %v385_v33, %v372_v19  ;;  %949 = vmatprep.subr.bf16.mxu1 %v948_v18  ;;  %v933_v20 = vld [vmem:[%s1491_s1 + $0x10] ss:$8 sm:$0x3] }
 0x188   : > { %v473_v34 = vpop.permute.xlu0 %472  ;;  %951 = vmatpush1.bf16.msra.mxu1 %v950_v21 }
 0x189   : > { %v477_v35 = vsel %vm476_vm8, %v469_v16, %v473_v34  ;;  %v479_v36 = vsel %vm476_vm8, %v473_v34, %v469_v16  ;;  %v403_v37 = vpop.permute.xlu1 %402  ;;  %v952_v43 = vpack.c.bf16 %v391_v30, %v1291_v40  ;;  %v954_v22 = vpack.c.bf16 %v390_v26, %v1289_v39 }
 0x18a   : > { %v494_v44 = vmul.f32 %v487_v23, %v477_v35  ;;  %v495_v45 = vmul.f32 %v491_v24, %v479_v36  ;;  %v406_v32 = vsel %vm404_vm5, %v1263_v25, %v403_v37  ;;  %v408_v33 = vsel %vm404_vm5, %v403_v37, %v1263_v25 }
 0x18b   : > { %v424_v46 = vmul.f32 %v415_v41, %v408_v33  ;;  %v425_v52 = vmul.f32 %v419_v42, %v406_v32  ;;  %953 = vmatprep.subr.bf16.mxu1 %v952_v43  ;;  %v521_v42 = vrot.slane %v931_v53, %v1270_v28  ;;  %v589_v35 = vrot.slane %v933_v20, %v1270_v28 }
 0x18c   : > { %v503_v40 = vpop.permute.xlu0 %502  ;;  %955 = vmatpush1.bf16.msra.mxu1 %v954_v22  ;;  %v593_v36 = vrot.slane %v933_v20, %v1272_v29 }
 0x18d   : > { %v437_v39 = vpop.permute.xlu1 %436  ;;  %v956_v54 = vpack.c.bf16 %v425_v52, %v1311_v49  ;;  %v958_v55 = vpack.c.bf16 %v424_v46, %v1309_v48 }
 0x18e   : > { %v440_v25 = vsel %vm438_vm6, %v1274_v31, %v437_v39  ;;  %v442_v41 = vsel %vm438_vm6, %v437_v39, %v1274_v31 }
 0x18f   : > { %v458_v60 = vmul.f32 %v449_v50, %v442_v41  ;;  %v459_v61 = vmul.f32 %v453_v51, %v440_v25  ;;  %957 = vmatprep.subr.bf16.mxu1 %v956_v54  ;;  %v932_v50 = vld [vmem:[%s1491_s1 + $0x7] ss:$8 sm:$0x3]  ;;  %v647_v25 = vld [vmem:[#allocation2 + $0x120] sm:$0x1] }
 0x190   : > { %v507_v62 = vpop.permute.xlu0 %506  ;;  %959 = vmatpush1.bf16.msra.mxu1 %v958_v55  ;;  %v555_v7 = vrot.slane %v932_v50, %v1270_v28  ;;  %v559_v9 = vrot.slane %v932_v50, %v1272_v29  ;;  %v648_v55 = vld [vmem:[#allocation2 + $0x128] sm:$0x1]  ;;  %v227_v41 = vld [vmem:[%s1493_s3] sm:$0xff] }
 0x191   : > { %v511_v48 = vsel %vm510_vm9, %v503_v40, %v507_v62  ;;  %v513_v49 = vsel %vm510_vm9, %v507_v62, %v503_v40  ;;  %v573_v63 = vpop.permute.xlu1 %572  ;;  %v960_v0 = vpack.c.bf16 %v459_v61, %v1327_v58  ;;  %v962_v31 = vpack.c.bf16 %v458_v60, %v1325_v57  ;;  %v755_v50 = vld [vmem:[#allocation2 + $0x20] sm:$0x1] }
 0x192   : > { %v528_v3 = vmul.f32 %v521_v42, %v511_v48  ;;  %v529_v4 = vmul.f32 %v525_v59, %v513_v49 }
 0x193   : > { %961 = vmatprep.subr.bf16.mxu1 %v960_v0 }
 0x194   : > { %v537_v51 = vpop.permute.xlu0 %536  ;;  %963 = vmatpush1.bf16.msra.mxu1 %v962_v31 }
 0x195   : > { %v475_v5 = vpop.permute.xlu1 %474  ;;  %965 = vmatprep.subr.bf16.mxu1 %v964_v14 }
 0x196   : > { %v478_v57 = vsel %vm476_vm8, %v1286_v38, %v475_v5  ;;  %v480_v58 = vsel %vm476_vm8, %v475_v5, %v1286_v38 }
 0x197   : > { %v496_v11 = vmul.f32 %v487_v23, %v478_v57  ;;  %v497_v15 = vmul.f32 %v491_v24, %v480_v58 }
 0x198   : > { %v541_v16 = vpop.permute.xlu0 %540  ;;  %967 = vmatpush1.bf16.msra.mxu1 %v966_v13 }
 0x199   : > { %v545_v8 = vsel %vm544_vm10, %v537_v51, %v541_v16  ;;  %v547_v12 = vsel %vm544_vm10, %v541_v16, %v537_v51  ;;  %v509_v14 = vpop.permute.xlu1 %508  ;;  %v968_v17 = vpack.c.bf16 %v497_v15, %v495_v45  ;;  %v970_v38 = vpack.c.bf16 %v496_v11, %v494_v44  ;;  %v231_v51 = vld [vmem:[%s1494_s4] sm:$0xf] }
 0x19a   : > { %v562_v18 = vmul.f32 %v555_v7, %v545_v8  ;;  %v563_v21 = vmul.f32 %v559_v9, %v547_v12  ;;  %v512_v19 = vsel %vm510_vm9, %v1304_v47, %v509_v14  ;;  %v514_v6 = vsel %vm510_vm9, %v509_v14, %v1304_v47 }
 0x19b   : > { %v530_v10 = vmul.f32 %v521_v42, %v512_v19  ;;  %v531_v13 = vmul.f32 %v525_v59, %v514_v6  ;;  %969 = vmatprep.subr.bf16.mxu1 %v968_v17  ;;  %v229_v42 = vld [vmem:[%s1493_s3 + $0x10] sm:$0xff] }
 0x19c   : > { %v571_v23 = vpop.permute.xlu0 %570  ;;  %971 = vmatpush1.bf16.msra.mxu1 %v970_v38 }
 0x19d   : > { %v543_v24 = vpop.permute.xlu1 %542  ;;  %v972_v26 = vpack.c.bf16 %v531_v13, %v529_v4  ;;  %v974_v30 = vpack.c.bf16 %v530_v10, %v528_v3  ;;  %v756_v4 = vld [vmem:[#allocation2 + $0x28] sm:$0x1] }
 0x19e   : > { %v546_v34 = vsel %vm544_vm10, %v1323_v56, %v543_v24  ;;  %v548_v47 = vsel %vm544_vm10, %v543_v24, %v1323_v56 }
 0x19f   : > { %v564_v37 = vmul.f32 %v555_v7, %v546_v34  ;;  %v565_v43 = vmul.f32 %v559_v9, %v548_v47  ;;  %973 = vmatprep.subr.bf16.mxu1 %v972_v26 }
 0x1a0   : > { %v575_v22 = vpop.permute.xlu0 %574  ;;  %975 = vmatpush1.bf16.msra.mxu1 %v974_v30 }
 0x1a1   : > { %v579_v44 = vsel %vm578_vm11, %v571_v23, %v575_v22  ;;  %v581_v45 = vsel %vm578_vm11, %v575_v22, %v571_v23  ;;  %v577_v32 = vpop.permute.xlu1 %576  ;;  %v976_v33 = vpack.c.bf16 %v565_v43, %v563_v21  ;;  %v978_v46 = vpack.c.bf16 %v564_v37, %v562_v18 }
 0x1a2   : > { %v596_v52 = vmul.f32 %v589_v35, %v579_v44  ;;  %v597_v56 = vmul.f32 %v593_v36, %v581_v45  ;;  %v580_v28 = vsel %vm578_vm11, %v573_v63, %v577_v32  ;;  %v582_v29 = vsel %vm578_vm11, %v577_v32, %v573_v63 }
 0x1a3   : > { %v598_v53 = vmul.f32 %v589_v35, %v580_v28  ;;  %v599_v40 = vmul.f32 %v593_v36, %v582_v29  ;;  %977 = vmatprep.subr.bf16.mxu1 %v976_v33 }
 0x1a4   : > { %979 = vmatpush1.bf16.msra.mxu1 %v978_v46 }
 0x1a5   : > { %v980_v39 = vpack.c.bf16 %v599_v40, %v597_v56  ;;  %v982_v54 = vpack.c.bf16 %v598_v53, %v596_v52 }
 0x1a7   : > { %981 = vmatprep.subr.bf16.mxu1 %v980_v39 }
 0x1a8   : > { %983 = vmatpush1.bf16.msra.mxu1 %v982_v54 }
 0x1a9   : > { %934 = vmatprep.subr.msk.mxu1 %vm656_vm12, %v648_v55 }
 0x1ac   : > { %935 = vmatpush1.msk.msra.mxu1 %vm656_vm12, %v647_v25 }
 0x1ad   : > { %728 = vmatmul.mubr.f32.vlgmr.msra.gmra.mrb[0].mxu1 %v227_v41 }
 0x1ae   : > { %937 = vmatprep.mubr.msk.f32.mxu1 %vm649_vm3, %v230_v27 }
 0x1b1   : > { %734 = vmatmul.mubr.f32.gmra.mrb[2].mxu1 %v229_v42 }
 0x280   : > { %v729_v59 = vpop.f32.mrb[0].mxu1 }
 0x281   : > { %v740_v60 = vmax.f32 %v729_v59, 0.0  ;;  %v731_v61 = vpop.f32.mrb[1].mxu1 }
 0x282   : > { %v741_v62 = vmax.f32 %v731_v61, 0.0 }
 0x284   : > { %v735_v48 = vpop.f32.mrb[2].mxu1 }
 0x285   : > { %v742_v49 = vmax.f32 %v735_v48, 0.0  ;;  %v737_v63 = vpop.f32.mrb[3].mxu1 }
 0x286   : > { %v743_v0 = vmax.f32 %v737_v63, 0.0 }
 0x287   : > { %v986_v31 = vpack.c.bf16 %v742_v49, %v740_v60 }
 0x288   : > { %v984_v3 = vpack.c.bf16 %v743_v0, %v741_v62 }
 0x28a   : > { %985 = vmatprep.subr.bf16.mxu0 %v984_v3 }
 0x28b   : > { %987 = vmatpush1.bf16.msra.mxu0 %v986_v31 }
 0x28c   : > { %938 = vmatprep.subr.msk.mxu0 %vm656_vm12, %v756_v4 }
 0x28f   : > { %939 = vmatpush1.msk.msra.mxu0 %vm656_vm12, %v755_v50 }
 0x290   : > { %940 = vmatmul.mubr.msk.f32.vlgmr.msra.gmra.mrb[4].mxu0 %vm649_vm3, %v231_v51 }
 0x363   : > { %v832_v5 = vpop.f32.mrb[4].mxu0 }
 0x364   : > { %v833_v57 = vadd.f32 %v832_v5, %v1197_v2  ;;  %v834_v58 = vpop.f32.mrb[5].mxu0 }
 0x365   : > { %v835_v7 = vadd.f32 %v834_v58, %v1195_v1 }
 0x367   : > { %v839_v9 = vcombine.low %v833_v57, %v835_v7 }
 0x369   : > { %841 = vst [vmem:[%s217_s25] sm:$0xff] %v839_v9 }
 0x36a   : > { %1050 = shalt.err (!%p1047_p3)
}
 0x36b   : > { %s1051_s12 = scalar_lea.hbm %s1448_s7, 128  ;;  %s1055_s15 = scalar_lea.hbm %s1495_s5, 256 }
 0x36c   : > { %p1052_p4 = scmp.ne.s32.totalorder %s1448_s7, %s1051_s12  ;;  %p1056_p9 = scmp.lt.u32.totalorder %s1448_s7, %s1495_s5 }
 0x36d   : > { %p1057_p10 = scmp.lt.u32.totalorder %s1055_s15, %s1051_s12  ;;  %p1059_p12 = scmp.lt.u32.totalorder %s1051_s12, %s1448_s7 }
 0x36e   : > { %p1053_p7 = pnand %p1052_p4, %p1180_p5 }
 0x36f   : > { %p1058_p11 = por %p1057_p10, %p1056_p9 }
 0x370   : > { %p1054_p8 = pneg %p1053_p7 }
 0x371   : > { %p1060_p13 = por %p1059_p12, %p1058_p11 }
 0x373   : > { %p1061_p0 = pnand %p1060_p13, %p1054_p8 }
 0x375   : > { %1064 = shalt.err (!%p1061_p0)
}
 0x376   : > { %988 = dma.vmem_to_hbm [thread:$0]  (%p1180_p5), %s1450_s26, 128, %s1448_s7, %s843_s8  }
 0x377 PF: > { %p994_p1 = scmp.ge.s32.totalorder %s1099_s21, 2  ;;  %s869_s23 = sand.u32 1, %s1087_s18  }
 0x378   : > { %s870_s25 = scalar_lea.sflag [#allocation4], %s869_s23 }
 0x379   : > { %p991_p2 = pnand %p994_p1, %p1184_p6 }
 0x37b   : > { %1082 = dma.done.wait (!%p991_p2), %s870_s25, 128  }
 0x37c   : > { %1084 = vsyncadd (!%p991_p2), %s870_s25, 4294967168  ;;  %p15_p3 = scmp.ge.s32.totalorder %s1167_s24, 4   ;;  %s1500_s18 = smov %s1091_s19 }
 0x37d   : > { %s1501_s19 = smov %s1095_s20  ;;  %s1502_s20 = smov %s1178_s27 }
 0x37e   : > { %s1503_s21 = smov %s1167_s24  ;;  %17 = sbr.rel (!%p15_p3) target bundleno = 3 (0x3), region = 84 }
 0x385   :  { %875 = vsyncpa [#allocation4], 1 }
 0x386   :  { %877 = vsyncpa [#allocation4 + $0x1], 1 }

</bundles_post_ra>
